<compile_context>
chip_gen: v6e
topology: v6e:2x2x1
jax: 0.10.0
libtpu: 0.0.40
codegen_flags: <defaults>
</compile_context>

<pallas_src>
import math

import jax
import jax.numpy as jnp
from jax.experimental import pallas as pl
from jax.experimental.pallas import tpu as pltpu

EPS = 1e-12                        # torch.nn.functional.normalize default eps
LANES = 128                        # TPU vreg lane width
MAX_PACKED_LANES = 512             # cap on packed row width (seg matrix size)
TARGET_BLOCK_BYTES = 4 << 20       # ~4 MiB of input per grid step


def _cdiv(a, b):
    return -(-a // b)


def _rmsnorm_packed_kernel(x_ref, g_ref, seg_ref, o_ref):
    """Lane-packed path.  x_ref/o_ref/g_ref: (Tr, L); seg_ref: (L, L) bf16.

    Each row of x_ref holds L // D consecutive sequence positions.  seg_ref is
    block-diagonal ones, so sq @ seg broadcasts each position's sum of squares
    back over its own D-wide lane segment (runs on the otherwise-idle MXU).
    The f32 squares are split into bf16 hi/lo parts -> two exact-RHS bf16 MXU
    passes reproduce ~f32 accuracy at 1/3 the passes of precision=HIGHEST.
    """
    x = x_ref[...].astype(jnp.float32)
    sq = x * x
    sq_hi = sq.astype(jnp.bfloat16)
    sq_lo = (sq - sq_hi.astype(jnp.float32)).astype(jnp.bfloat16)
    seg = seg_ref[...]
    ssq = (jnp.dot(sq_hi, seg, preferred_element_type=jnp.float32)
           + jnp.dot(sq_lo, seg, preferred_element_type=jnp.float32))
    inv = jax.lax.rsqrt(jnp.maximum(ssq, EPS * EPS))     # EUP; == 1/max(||x||,EPS)
    o_ref[...] = (x * inv * g_ref[...].astype(jnp.float32)).astype(o_ref.dtype)


def _rmsnorm_plain_kernel(x_ref, g_ref, o_ref):
    """Plain path (D already lane-dense or too wide to pack).  Refs: (Tr, D)."""
    x = x_ref[...].astype(jnp.float32)
    ssq = jnp.sum(x * x, axis=-1, keepdims=True)          # XLU row reduce
    inv = jax.lax.rsqrt(jnp.maximum(ssq, EPS * EPS))
    o_ref[...] = (x * inv * g_ref[...].astype(jnp.float32)).astype(o_ref.dtype)


def _vmem_budget_bytes():
    """~3/4 of per-core VMEM when discoverable, else a conservative default."""
    try:
        cap = getattr(pltpu.get_tpu_info(), "vmem_capacity_bytes", None)
        if cap:
            return int(cap) * 3 // 4
    except Exception:
        pass
    return 48 << 20                 # safe on v5e/v6e (128 MiB) and v7x (64 MiB)


def _pick_row_block(Rtot, Q, row_bytes, align, target_bytes):
    """Rows per grid block for the flattened (Rtot, L) matrix.

    Legal Tr: a divisor of Q (within-batch tiling; gamma via periodic
    index_map) or a whole number of batches m*Q (gamma tiled to one block,
    constant index_map; ragged tail allowed).  Tr must be a multiple of the
    dtype sublane count or equal Rtot.  Prefer the largest Tr that fits the
    byte target and still leaves >= 2 grid steps (megacore).
    """
    B = Rtot // Q
    budget = max(align, target_bytes // max(row_bytes, 1))
    cands = set()
    for d in range(1, math.isqrt(Q) + 1):                 # divisors of Q
        if Q % d == 0:
            for t in (d, Q // d):
                if t % align == 0:
                    cands.add(t)
    m_max = min(B, max(1, budget // max(Q, 1)) + 1)       # whole-batch multiples
    for m in list(range(1, m_max + 1)) + [B]:
        t = m * Q
        if t % align == 0 or t == Rtot:
            cands.add(t)
    in_budget = [t for t in cands if t <= budget]
    multi = [t for t in in_budget if _cdiv(Rtot, t) >= 2]
    if multi:
        return max(multi)
    if in_budget:
        return max(in_budget)
    return min(cands)


def rmsnorm(x, gamma, *, target_block_bytes=None):
    """y = F.normalize(x, dim=-1) * sqrt(dim) * gamma.

    x: (B, H, S, D); gamma: (H, 1, D).  Returns (B, H, S, D) in x.dtype.
    """
    B, H, S, D = x.shape
    assert gamma.shape == (H, 1, D), (gamma.shape, (H, 1, D))

    dtype = x.dtype
    itemsize = dtype.itemsize
    align = {4: 8, 2: 16, 1: 32}.get(itemsize, 8)

    vmem_budget = _vmem_budget_bytes()
    if target_block_bytes is None:
        target_block_bytes = min(TARGET_BLOCK_BYTES, vmem_budget // 8)

    # Fold the sqrt(dim) scale into gamma (one fewer full-tile multiply).
    g32 = gamma.astype(jnp.float32) * (float(D) ** 0.5)

    # Generalized lane packing: p positions per 128-lane-aligned row.
    gcd = math.gcd(D, LANES)
    p = LANES // gcd
    L = p * D                                   # = lcm(D, 128)
    packed = (D % LANES != 0) and (L <= MAX_PACKED_LANES)
    if not packed:
        p, L = 1, D

    if packed:
        R = _cdiv(S, p)
        Sp = R * p
        if Sp != S:                             # pad S so every row is full
            x = jnp.pad(x, ((0, 0), (0, 0), (0, Sp - S), (0, 0)))
        Q = H * R                               # rows per batch
        x2 = x.reshape(B, H, R, p, D).reshape(B * Q, L)
        g_rows = jnp.tile(g32[:, 0, :], (1, p))                       # (H, L)
        g_pat = jnp.broadcast_to(g_rows[:, None, :], (H, R, L)).reshape(Q, L)
        lane_seg = jnp.arange(L, dtype=jnp.int32) // D
        seg = (lane_seg[:, None] == lane_seg[None, :]).astype(jnp.bfloat16)
    else:
        Sp = S
        Q = H * S
        x2 = x.reshape(B * Q, L)
        g_pat = jnp.broadcast_to(g32, (H, S, D)).reshape(Q, L)
        seg = None
    g_pat = g_pat.astype(dtype)                 # keep gamma in x.dtype

    Rtot = B * Q
    Tr = _pick_row_block(Rtot, Q, L * itemsize, align, target_block_bytes)
    nblk = _cdiv(Rtot, Tr)

    x_spec = pl.BlockSpec((Tr, L), lambda i: (i, 0))
    out_spec = pl.BlockSpec((Tr, L), lambda i: (i, 0))
    if Tr % Q == 0:                             # whole batches per block
        m = Tr // Q
        g_arr = jnp.tile(g_pat, (m, 1)) if m > 1 else g_pat
        g_spec = pl.BlockSpec((Tr, L), lambda i: (0, 0))       # resident
    else:                                       # Tr | Q: periodic gamma tiles
        nper = Q // Tr
        g_arr = g_pat
        g_spec = pl.BlockSpec((Tr, L), lambda i: (i % nper, 0))

    # VMEM accounting: x + out double-buffered, gamma (+seg) resident.
    blk_bytes = Tr * L * itemsize
    need = 6 * blk_bytes + (2 * L * L * 2 if packed else 0) + (2 << 20)
    vmem_limit = int(min(max(need, 32 << 20), max(vmem_budget, 32 << 20)))

    compiler_params = pltpu.CompilerParams(
        dimension_semantics=("parallel",),
        vmem_limit_bytes=vmem_limit,
    )
    out_shape = jax.ShapeDtypeStruct((Rtot, L), dtype)

    if packed:
        out2 = pl.pallas_call(
            _rmsnorm_packed_kernel,
            out_shape=out_shape,
            grid=(nblk,),
            in_specs=[x_spec, g_spec, pl.BlockSpec((L, L), lambda i: (0, 0))],
            out_specs=out_spec,
            compiler_params=compiler_params,
        )(x2, g_arr, seg)
        y = out2.reshape(B, H, R, p, D).reshape(B, H, Sp, D)
        if Sp != S:
            y = y[:, :, :S, :]
        return y
    else:
        out2 = pl.pallas_call(
            _rmsnorm_plain_kernel,
            out_shape=out_shape,
            grid=(nblk,),
            in_specs=[x_spec, g_spec],
            out_specs=out_spec,
            compiler_params=compiler_params,
        )(x2, g_arr)
        return out2.reshape(B, H, S, D)


def rmsnorm_reference(x, gamma):
    xf = x.astype(jnp.float32)
    n = jnp.sqrt(jnp.sum(xf * xf, axis=-1, keepdims=True))
    y = xf / jnp.maximum(n, EPS) * (x.shape[-1] ** 0.5)
    y = y * gamma.astype(jnp.float32)[None, :, :, :]
    return y.astype(x.dtype)


if __name__ == "__main__":
    key = jax.random.PRNGKey(0)
    ks = jax.random.split(key, 12)

    def check(x, gamma, atol, rtol, **kw):
        out = jax.block_until_ready(rmsnorm(x, gamma, **kw))
        ref = rmsnorm_reference(x, gamma)
        assert out.shape == x.shape and out.dtype == x.dtype
        of, rf = out.astype(jnp.float32), ref.astype(jnp.float32)
        err = float(jnp.max(jnp.abs(of - rf)))
        assert jnp.allclose(of, rf, atol=atol, rtol=rtol), err

    # 1) MaxViT-style head dim: packed path (D=32 -> 4 positions per row).
    x = jax.random.normal(ks[0], (2, 4, 8, 32), jnp.float32)
    g = 1.0 + 0.1 * jax.random.normal(ks[1], (4, 1, 32), jnp.float32)
    check(x, g, 1e-4, 1e-4)

    # 2) Generalized packing: D=48 -> p=8, L=384 (no masked-store fallback).
    x = jax.random.normal(ks[2], (4, 2, 16, 48), jnp.float32)
    g = 1.0 + 0.1 * jax.random.normal(ks[3], (2, 1, 48), jnp.float32)
    check(x, g, 1e-4, 1e-4)

    # 3) Within-batch row tiling + periodic gamma index_map (tiny block target).
    x = jax.random.normal(ks[4], (2, 4, 32, 32), jnp.float32)
    g = 1.0 + 0.1 * jax.random.normal(ks[5], (4, 1, 32), jnp.float32)
    check(x, g, 1e-4, 1e-4, target_block_bytes=16 * 512)

    # 4) S not divisible by the packing factor (pad + slice path).
    x = jax.random.normal(ks[6], (2, 4, 10, 32), jnp.float32)
    g = 1.0 + 0.1 * jax.random.normal(ks[7], (4, 1, 32), jnp.float32)
    check(x, g, 1e-4, 1e-4)

    # 5) Plain lane-dense path: D = 128 (no packing needed).
    x = jax.random.normal(ks[8], (2, 2, 8, 128), jnp.float32)
    g = 1.0 + 0.1 * jax.random.normal(ks[9], (2, 1, 128), jnp.float32)
    check(x, g, 1e-5, 1e-5)

    # 6) bf16 inputs (gamma stored in x.dtype inside the kernel).
    x = jax.random.normal(ks[10], (2, 4, 8, 32), jnp.float32).astype(jnp.bfloat16)
    g = 1.0 + 0.1 * jax.random.normal(ks[11], (4, 1, 32), jnp.float32)
    check(x, g, 1e-1, 1e-1)

    print("KERNEL_OK")
</pallas_src>

<mosaic_0001>
module attributes {stable_mosaic.version = 11 : i64} {
  func.func @_rmsnorm_packed_kernel(%arg0: i32, %arg1: memref<8x128xf32, #tpu.memory_space<vmem>>, %arg2: memref<8x128xf32, #tpu.memory_space<vmem>>, %arg3: memref<128x128xbf16, #tpu.memory_space<vmem>>, %arg4: memref<8x128xf32, #tpu.memory_space<vmem>>) attributes {dimension_semantics = [#tpu.dimension_semantics<parallel>], iteration_bounds = array<i64: 2>, scalar_prefetch = 0 : i64, scratch_operands = 0 : i64, tpu.core_type = #tpu.core_type<tc>, window_params = [{transform_indices = @transform_0, window_bounds = array<i64: 8, 128>}, {pipeline_mode = #tpu.pipeline_mode<synchronous>, transform_indices = @transform_1, window_bounds = array<i64: 8, 128>}, {pipeline_mode = #tpu.pipeline_mode<synchronous>, transform_indices = @transform_2, window_bounds = array<i64: 128, 128>}, {transform_indices = @transform_3, window_bounds = array<i64: 8, 128>}]} {
    %c0 = arith.constant 0 : index
    %c0_0 = arith.constant 0 : index
    %0 = vector.load %arg1[%c0, %c0_0] : memref<8x128xf32, #tpu.memory_space<vmem>>, vector<8x128xf32>
    %1 = arith.mulf %0, %0 : vector<8x128xf32>
    %2 = arith.truncf %1 : vector<8x128xf32> to vector<8x128xbf16>
    %3 = arith.extf %2 : vector<8x128xbf16> to vector<8x128xf32>
    %4 = arith.subf %1, %3 : vector<8x128xf32>
    %5 = arith.truncf %4 : vector<8x128xf32> to vector<8x128xbf16>
    %c0_1 = arith.constant 0 : index
    %c0_2 = arith.constant 0 : index
    %6 = vector.load %arg3[%c0_1, %c0_2] : memref<128x128xbf16, #tpu.memory_space<vmem>>, vector<128x128xbf16>
    %cst = arith.constant dense<0.000000e+00> : vector<8x128xf32>
    %7 = tpu.matmul %2, %6, %cst {dimension_numbers = #tpu.dot_dimension_numbers<[1], [0], [0], [1], [0, 0, 1, 1], [], []>} : vector<8x128xbf16>, vector<128x128xbf16>, vector<8x128xf32> -> vector<8x128xf32>
    %cst_3 = arith.constant dense<0.000000e+00> : vector<8x128xf32>
    %8 = tpu.matmul %5, %6, %cst_3 {dimension_numbers = #tpu.dot_dimension_numbers<[1], [0], [0], [1], [0, 0, 1, 1], [], []>} : vector<8x128xbf16>, vector<128x128xbf16>, vector<8x128xf32> -> vector<8x128xf32>
    %9 = arith.addf %7, %8 : vector<8x128xf32>
    %cst_4 = arith.constant 1.000000e-24 : f32
    %10 = vector.broadcast %cst_4 : f32 to vector<8x128xf32>
    %11 = arith.maximumf %9, %10 : vector<8x128xf32>
    %12 = math.rsqrt %11 : vector<8x128xf32>
    %13 = arith.mulf %0, %12 : vector<8x128xf32>
    %c0_5 = arith.constant 0 : index
    %c0_6 = arith.constant 0 : index
    %14 = vector.load %arg2[%c0_5, %c0_6] : memref<8x128xf32, #tpu.memory_space<vmem>>, vector<8x128xf32>
    %15 = arith.mulf %13, %14 : vector<8x128xf32>
    %c0_7 = arith.constant 0 : index
    %c0_8 = arith.constant 0 : index
    %16 = vector.load %arg4[%c0_7, %c0_8] : memref<8x128xf32, #tpu.memory_space<vmem>>, vector<8x128xf32>
    tpu.vector_store %arg4[%c0_7, %c0_8], %15 {strides = array<i32>} : memref<8x128xf32, #tpu.memory_space<vmem>>, vector<8x128xf32>,
    return
  }
  func.func @transform_0(%arg0: i32) -> (i32, i32) {
    %c0_i32 = arith.constant 0 : i32
    %c0_i32_0 = arith.constant 0 : i32
    return %arg0, %c0_i32 : i32, i32
  }
  func.func @transform_1(%arg0: i32) -> (i32, i32) {
    %c0_i32 = arith.constant 0 : i32
    %c0_i32_0 = arith.constant 0 : i32
    %c0_i32_1 = arith.constant 0 : i32
    return %c0_i32, %c0_i32_0 : i32, i32
  }
  func.func @transform_2(%arg0: i32) -> (i32, i32) {
    %c0_i32 = arith.constant 0 : i32
    %c0_i32_0 = arith.constant 0 : i32
    %c0_i32_1 = arith.constant 0 : i32
    return %c0_i32, %c0_i32_0 : i32, i32
  }
  func.func @transform_3(%arg0: i32) -> (i32, i32) {
    %c0_i32 = arith.constant 0 : i32
    %c0_i32_0 = arith.constant 0 : i32
    return %arg0, %c0_i32 : i32, i32
  }
}

</mosaic_0001>

<bundles_post_ra>
// kernel: tpu_custom_call.1
= control target key start
LH: loop header
LB: loop body
LE: loop exit
PB: predicated region body
PF: predicated region fallthrough
CT: control target
= control target key end

     0   :  { %8 = vsyncpa [#allocation3], 0  ;;  %s983_s0 = inlined_call_operand.hbm [shape: f32[16,128], index: 0, kind: input, shape index: {}]   ;;  %s984_s1 = inlined_call_operand.hbm [shape: f32[8,128], index: 1, kind: input, shape index: {}]   ;;  %s985_s2 = inlined_call_operand.hbm [shape: bf16[128,128], index: 2, kind: input, shape index: {}]   ;;  %s986_s3 = inlined_call_operand.hbm [shape: f32[16,128], index: 3, kind: output, shape index: {}]  }
   0x1   :  { %10 = vsyncpa [#allocation3 + $0x1], 0 }
   0x2   :  { %11 = vsyncpa [#allocation6], 0 }
   0x3   :  { %12 = vsyncpa [#allocation4], 0 }
   0x4   :  { %14 = vsyncpa [#allocation4 + $0x1], 0  ;;  %s814_s12 = smov 0   ;;  %s816_s13 = smov 0  }
   0x5   :  { %s818_s14 = smov 0   ;;  %s820_s15 = smov 0  }
   0x6 LB: > { %s835_s16 = sadd.s32 4294967295, %s784_s15   ;;  %s473_s17 = sadd.s32 4294967294, %s784_s15   ;;  %s784_s15 = sphi %s820_s15, %s1008_s15   ;;  %s780_s14 = sphi %s818_s14, %s1007_s14   ;;  %s776_s13 = sphi %s816_s13, %s1006_s13   ;;  %s772_s12 = sphi %s814_s12, %s1005_s12  }
   0x7   : > { %p40_p0 = scmp.ne.s32.totalorder %s776_s13, %s772_s12  ;;  %p987_p1 = scmp.eq.s32.totalorder %s835_s16, 0 }
   0x8   : > { %p112_p3 = scmp.eq.s32.totalorder %s473_s17, 1  ;;  %p474_p5 = scmp.ge.s32.totalorder %s784_s15, 1 }
   0x9   : > { %p844_p4 = por %p987_p1, %p40_p0  ;;  %p119_p7 = scmp.lt.s32.totalorder %s784_s15, 3 }
   0xa   : > { %p849_p6 = por %p112_p3, %p40_p0  ;;  %s786_s21 = smov [#allocation5]  }
   0xb   : > { %s991_s18 = scalar_select %p844_p4, 1, 0 }
   0xc   : > { %s992_s19 = scalar_select %p849_p6, 1, 0 }
   0xd   : > { %p854_p8 = pnand %p474_p5, %p119_p7  ;;  %s132_s22 = sshll.u32 %s786_s21, 4  ;;  %s133_s22 = int_to_ptr.vmem [resolvable:$true] %s132_s22 }
   0xe   : > { %s787_s23 = smov [#allocation7]   ;;  %s647_s26 = scalar_lea.vmem %s133_s22, 128 }
   0xf   : > { %s993_s20 = scalar_select %p854_p8, 1, 0 }
  0x10   : > { %p567_p10 = pneg %p854_p8  ;;  %s142_s24 = sshll.u32 %s787_s23, 4  ;;  %s143_s24 = int_to_ptr.vmem [resolvable:$true] %s142_s24 }
  0x11   : > { %p648_p13 = scmp.ne.s32.totalorder %s133_s22, %s647_s26  ;;  %p655_p5 = scmp.lt.s32.totalorder %s133_s22, %s133_s22 }
  0x12   : > { %p863_p11 = pnand %p567_p10, %p987_p1  ;;  %p656_p7 = scmp.lt.s32.totalorder %s647_s26, %s647_s26 }
  0x14   : > { %p638_p12 = pneg %p863_p11  ;;  %p657_p9 = por %p656_p7, %p655_p5 }
  0x16   : > { %p650_p0 = pnand %p648_p13, %p638_p12 }
  0x18   : > { %p651_p3 = pneg %p650_p0 }
  0x1a   : > { %p658_p2 = pnand %p657_p9, %p651_p3 }
  0x1c   : > { %661 = shalt.err (!%p658_p2)
}
  0x1d   : > { %570 = dma.hbm_to_vmem [thread:$0]  (!%p863_p11), %s984_s1, 128, %s133_s22, [#allocation6]  }
  0x1e   : > { %s673_s29 = scalar_lea.vmem %s143_s24, 1024  ;;  %p681_p13 = scmp.lt.s32.totalorder %s143_s24, %s143_s24 }
  0x1f   : > { %p674_p10 = scmp.ne.s32.totalorder %s143_s24, %s673_s29  ;;  %p682_p0 = scmp.lt.s32.totalorder %s673_s29, %s673_s29 }
  0x21   : > { %p676_p1 = pnand %p674_p10, %p638_p12  ;;  %p683_p4 = por %p682_p0, %p681_p13 }
  0x23   : > { %p677_p6 = pneg %p676_p1 }
  0x25   : > { %p684_p8 = pnand %p683_p4, %p677_p6 }
  0x27   : > { %687 = shalt.err (!%p684_p8)
}
  0x28   : > { %s788_s30 = smov 64   ;;  %s789_s4 = smov 4  }
  0x29   : > { %573 = dma.hbm_to_vmem [thread:$0]  (!%p863_p11), %s985_s2, 1024, %s143_s24, [#allocation6], %s788_s30, %s788_s30, %s789_s4  }
  0x2a   : > { %s886_s7 = sadd.s32 1, %s784_s15   ;;  %s27_s8 = sadd.s32 1, %s780_s14 }
  0x2b   : > { %s24_s9 = ssub.s32 %s784_s15, %s886_s7  ;;  %p34_p1 = scmp.ne.s32.totalorder %s780_s14, %s776_s13 }
  0x2c   : > { %p25_p2 = scmp.eq.s32.totalorder %s24_s9, 0  ;;  %p35_p4 = scmp.eq.s32.totalorder %s784_s15, 0 }
  0x2d   : > { %p995_p6 = scmp.eq.s32.totalorder %s835_s16, 1  ;;  %p584_p9 = scmp.lt.s32.totalorder %s784_s15, 2 }
  0x2e   : > { %s902_s11 = scalar_select %p25_p2, %s780_s14, %s27_s8  }
  0x2f   : > { %p896_p8 = por %p995_p6, %p34_p1  ;;  %p36_p12 = por %p35_p4, %p34_p1 }
  0x30   : > { %s156_s17 = sand.u32 1, %s780_s14   ;;  %s479_s22 = sshll.u32 %s784_s15, 7 }
  0x31   : > { %s996_s10 = scalar_select %p896_p8, 1, 0 }
  0x32   : > { %s478_s21 = sshll.u32 %s156_s17, 3  ;;  %s909_s25 = scalar_lea.hbm %s983_s0, %s479_s22 }
  0x33   : > { %s160_s26 = scalar_lea.vmem [#allocation2], %s478_s21  ;;  %p911_p11 = pnand %p584_p9, %p36_p12 }
  0x34   : > { %s167_s27 = sshll.u32 %s160_s26, 4  ;;  %s157_s29 = scalar_lea.sflag [#allocation3], %s156_s17  ;;  %s168_s27 = int_to_ptr.vmem [resolvable:$true] %s167_s27 }
  0x35   : > { %s688_s30 = scalar_lea.hbm %s909_s25, 128  ;;  %p690_p5 = pneg %p911_p11 }
  0x36   : > { %p689_p3 = scmp.ne.s32.totalorder %s909_s25, %s688_s30  ;;  %s693_s6 = scalar_lea.hbm %s983_s0, 256 }
  0x37   : > { %p694_p13 = scmp.lt.s32.totalorder %s909_s25, %s983_s0  ;;  %p695_p0 = scmp.lt.s32.totalorder %s693_s6, %s688_s30 }
  0x38   : > { %p691_p7 = pnand %p690_p5, %p689_p3 }
  0x39   : > { %p696_p1 = por %p695_p0, %p694_p13 }
  0x3a   : > { %p692_p10 = pneg %p691_p7 }
  0x3c   : > { %p697_p2 = pnand %p696_p1, %p692_p10 }
  0x3e   : > { %700 = shalt.err (!%p697_p2)
}
  0x3f   : > { %s701_s21 = scalar_lea.vmem %s168_s27, 128  ;;  %s790_s17 = smov [#allocation2]  }
  0x40   : > { %p702_p4 = scmp.ne.s32.totalorder %s168_s27, %s701_s21  ;;  %s706_s22 = sshll.u32 %s790_s17, 4  ;;  %s707_s22 = int_to_ptr.vmem [resolvable:$false] %s706_s22 }
  0x41   : > { %s708_s23 = scalar_lea.vmem %s707_s22, 256  ;;  %p709_p12 = scmp.lt.s32.totalorder %s168_s27, %s707_s22 }
  0x42   : > { %p704_p6 = pnand %p702_p4, %p690_p5  ;;  %p710_p3 = scmp.lt.s32.totalorder %s708_s23, %s701_s21 }
  0x44   : > { %p705_p9 = pneg %p704_p6  ;;  %p711_p7 = por %p710_p3, %p709_p12 }
  0x46   : > { %p712_p8 = pnand %p711_p7, %p705_p9 }
  0x48   : > { %715 = shalt.err (!%p712_p8)
}
  0x49   : > { %577 = dma.hbm_to_vmem [thread:$0]  (!%p911_p11), %s909_s25, 128, %s168_s27, %s157_s29  }
  0x4a   : > { %p998_p10 = scmp.ne.s32.totalorder %s993_s20, 0 }
  0x4b   : > { %s932_s24 = sand.u32 (!%p998_p10), 1, %s776_s13   ;;  %p999_p5 = scmp.ne.s32.totalorder (!%p998_p10), %s991_s18, 0 }
  0x4c   : > { %176 = sbr.rel (%p998_p10) target bundleno = 347 (0x15b), region = 32  ;;  %s481_s26 = sshll.u32 (!%p998_p10), %s932_s24, 3 }
  0x4d   : > { %s179_s30 = scalar_lea.sflag (!%p998_p10), [#allocation3], %s932_s24  ;;  %s182_s4 = scalar_lea.vmem (!%p998_p10), [#allocation2], %s481_s26 }
  0x51   : > { %759 = dma.done.wait (%p999_p5), %s179_s30, 128  }
  0x52   : > { %761 = vsyncadd (%p999_p5), %s179_s30, 4294967168  ;;  %p1000_p8 = scmp.eq.s32.totalorder %s835_s16, 0 }
  0x54   : > { %763 = dma.done.wait (%p1000_p8), [#allocation6], 1152   ;;  %p1001_p11 = pmov %p1000_p8 }
  0x55   : > { %v791_v0 = vmov 0.0   ;;  %vm792_vm0 = vmmov 0   ;;  %v626_v1 = vld [vmem:[#allocation7 + $0x38] sm:$0xff]   ;;  %v627_v2 = vld [vmem:[#allocation7 + $0x30] sm:$0xff]   ;;  %v628_v3 = vld [vmem:[#allocation7 + $0x28] sm:$0xff]   ;;  %s494_s18 = sshll.u32 %s835_s16, 7 }
  0x56   : > { %765 = vsyncadd (%p1001_p11), [#allocation6], 4294966144  ;;  %515 = vmatprep.subr.bf16.mxu0 %v791_v0  ;;  %535 = vmatprep.subr.bf16.mxu1 %v791_v0  ;;  %v629_v4 = vld [vmem:[#allocation7 + $0x20] sm:$0xff]   ;;  %v214_v5 = vld [vmem:[%s182_s4] sm:$0xff]  ;;  %s212_s20 = scalar_lea.vmem [#allocation8], %s481_s26  ;;  %s382_s29 = scalar_lea.hbm %s986_s3, %s494_s18 }
  0x57   : > { %531 = vmatprep.mubr.msk.bf16.mxu0 %vm792_vm0, %v791_v0  ;;  %551 = vmatprep.mubr.msk.bf16.mxu1 %vm792_vm0, %v791_v0  ;;  %v215_v6 = vmul.f32 %v214_v5, %v214_v5  ;;  %v630_v7 = vld [vmem:[#allocation7 + $0x18] sm:$0xff]   ;;  %v631_v9 = vld [vmem:[#allocation7 + $0x10] sm:$0xff]   ;;  %v632_v11 = vld [vmem:[#allocation7 + $0x8] sm:$0xff]   ;;  %s384_s25 = sshll.u32 %s212_s20, 4  ;;  %s371_s5 = scalar_lea.sflag [#allocation4], %s932_s24  ;;  %s385_s25 = int_to_ptr.vmem [resolvable:$true] %s384_s25 }
  0x58   : > { %516 = vmatpush3.bf16.msra.mxu0 %v626_v1  ;;  %536 = vmatpush3.bf16.msra.mxu1 %v626_v1  ;;  %v633_v13 = vld [vmem:[#allocation7] sm:$0xff]   ;;  %v367_v26 = vld [vmem:[#allocation5] sm:$0xff]  ;;  %s716_s6 = scalar_lea.vmem %s385_s25, 128  ;;  %p1002_p0 = scmp.ne.s32.totalorder %s996_s10, 0 }
  0x59   : > { %517 = vmatprep.subr.bf16.mxu0 %v791_v0  ;;  %537 = vmatprep.subr.bf16.mxu1 %v791_v0  ;;  %v216_v8 = vpack.c.bf16 %v215_v6, %v215_v6  ;;  %p717_p13 = scmp.ne.s32.totalorder %s385_s25, %s716_s6  ;;  %s793_s8 = smov [#allocation8]  }
  0x5a   : > { %s720_s9 = sshll.u32 %s793_s8, 4  ;;  %s721_s9 = int_to_ptr.vmem [resolvable:$false] %s720_s9 }
  0x5b   : > { %v217_v10 = vunpack.c.l.bf16 %v216_v8  ;;  %p718_p1 = pnand %p717_p13, %p1002_p0  ;;  %s722_s16 = scalar_lea.vmem %s721_s9, 256 }
  0x5c   : > { %518 = vmatpush3.bf16.msra.mxu0 %v627_v2  ;;  %538 = vmatpush3.bf16.msra.mxu1 %v627_v2  ;;  %p723_p4 = scmp.lt.s32.totalorder %s385_s25, %s721_s9  ;;  %p724_p6 = scmp.lt.s32.totalorder %s722_s16, %s716_s6 }
  0x5d   : > { %519 = vmatprep.subr.bf16.mxu0 %v791_v0  ;;  %539 = vmatprep.subr.bf16.mxu1 %v791_v0  ;;  %v218_v12 = vsub.f32 %v215_v6, %v217_v10  ;;  %p719_p2 = pneg %p718_p1 }
  0x5e   : > { %p725_p9 = por %p724_p6, %p723_p4 }
  0x5f   : > { %v219_v14 = vpack.c.bf16 %v218_v12, %v218_v12 }
  0x60   : > { %520 = vmatpush3.bf16.msra.mxu0 %v628_v3  ;;  %540 = vmatpush3.bf16.msra.mxu1 %v628_v3  ;;  %p726_p12 = pnand %p725_p9, %p719_p2 }
  0x61   : > { %521 = vmatprep.subr.bf16.mxu0 %v791_v0  ;;  %541 = vmatprep.subr.bf16.mxu1 %v791_v0 }
  0x64   : > { %522 = vmatpush3.bf16.msra.mxu0 %v629_v4  ;;  %542 = vmatpush3.bf16.msra.mxu1 %v629_v4 }
  0x65   : > { %523 = vmatprep.subr.bf16.mxu0 %v791_v0  ;;  %543 = vmatprep.subr.bf16.mxu1 %v791_v0 }
  0x68   : > { %524 = vmatpush3.bf16.msra.mxu0 %v630_v7  ;;  %544 = vmatpush3.bf16.msra.mxu1 %v630_v7 }
  0x69   : > { %525 = vmatprep.subr.bf16.mxu0 %v791_v0  ;;  %545 = vmatprep.subr.bf16.mxu1 %v791_v0 }
  0x6c   : > { %526 = vmatpush3.bf16.msra.mxu0 %v631_v9  ;;  %546 = vmatpush3.bf16.msra.mxu1 %v631_v9 }
  0x6d   : > { %527 = vmatprep.subr.bf16.mxu0 %v791_v0  ;;  %547 = vmatprep.subr.bf16.mxu1 %v791_v0 }
  0x70   : > { %528 = vmatpush3.bf16.msra.mxu0 %v632_v11  ;;  %548 = vmatpush3.bf16.msra.mxu1 %v632_v11 }
  0x71   : > { %529 = vmatprep.subr.bf16.mxu0 %v791_v0  ;;  %549 = vmatprep.subr.bf16.mxu1 %v791_v0 }
  0x74   : > { %530 = vmatpush3.bf16.msra.mxu0 %v633_v13  ;;  %550 = vmatpush3.bf16.msra.mxu1 %v633_v13 }
  0x77   : > { %532 = vmatmul.mubr.bf16.vlgmr.msra.gmra.mxu0 %v219_v14  ;;  %552 = vmatmul.mubr.bf16.vlgmr.msra.gmra.mxu1 %v216_v8 }
 0x137   : > { %v318_v15 = vpop.f32.mrf.mxu0  ;;  %v358_v16 = vpop.f32.mrf.mxu1 }
 0x138   : > { %v359_v17 = vadd.f32 %v358_v16, %v318_v15 }
 0x139   : > { %v533_v18 = vpop.f32.mrf.mxu0  ;;  %v553_v19 = vpop.f32.mrf.mxu1 }
 0x13a   : > { %v364_v20 = vmax.f32 %v359_v17, 1e-24 }
 0x13b   : > { %v321_v21 = vpop.f32.mrf.mxu0  ;;  %v361_v22 = vpop.f32.mrf.mxu1 }
 0x13c   : > { %634 = vrsqrt.f32 %v364_v20 }
 0x13d   : > { %v534_v23 = vpop.f32.mrf.mxu0  ;;  %v554_v24 = vpop.f32.mrf.mxu1 }
 0x149   : > { %v635_v25 = vpop.eup %634 }
 0x14a   : > { %v366_v27 = vmul.f32 %v635_v25, %v214_v5 }
 0x14c   : > { %v368_v28 = vmul.f32 %v367_v26, %v366_v27 }
 0x14e   : > { %369 = vst [vmem:[%s212_s20] sm:$0xff] %v368_v28 }
 0x14f   : > { %729 = shalt.err (!%p726_p12)
}
 0x150   : > { %s730_s21 = scalar_lea.hbm %s382_s29, 128  ;;  %s734_s23 = scalar_lea.hbm %s986_s3, 256 }
 0x151   : > { %p731_p3 = scmp.ne.s32.totalorder %s382_s29, %s730_s21  ;;  %p735_p5 = scmp.lt.s32.totalorder %s382_s29, %s986_s3 }
 0x152   : > { %p736_p8 = scmp.lt.s32.totalorder %s734_s23, %s730_s21 }
 0x153   : > { %p732_p7 = pnand %p731_p3, %p1002_p0 }
 0x154   : > { %p737_p11 = por %p736_p8, %p735_p5 }
 0x155   : > { %p733_p10 = pneg %p732_p7 }
 0x157   : > { %p738_p13 = pnand %p737_p11, %p733_p10 }
 0x159   : > { %741 = shalt.err (!%p738_p13)
}
 0x15a   : > { %565 = dma.vmem_to_hbm [thread:$0]  (%p1002_p0), %s385_s25, 128, %s382_s29, %s371_s5  }
 0x15b PF: > { %s396_s30 = sand.u32 1, %s772_s12   ;;  %p1003_p1 = scmp.ne.s32.totalorder %s992_s19, 0 }
 0x15c   : > { %p1004_p2 = scmp.ge.s32.totalorder %s784_s15, 2  ;;  %s397_s4 = scalar_lea.sflag [#allocation4], %s396_s30 }
 0x15e   : > { %p579_p4 = pnand %p1004_p2, %p1003_p1 }
 0x160   : > { %p580_p6 = pneg %p579_p4 }
 0x162   : > { %767 = dma.done.wait (%p580_p6), %s397_s4, 128  }
 0x163   : > { %769 = vsyncadd (%p580_p6), %s397_s4, 4294967168  ;;  %p17_p9 = scmp.ge.s32.totalorder %s886_s7, 4   ;;  %s1005_s12 = smov %s776_s13 }
 0x164   : > { %s1006_s13 = smov %s780_s14  ;;  %s1007_s14 = smov %s902_s11 }
 0x165   : > { %s1008_s15 = smov %s886_s7  ;;  %19 = sbr.rel (!%p17_p9) target bundleno = 6 (0x6), region = 85 }
 0x16a   :  { %402 = vsyncpa [#allocation3], 1 }
 0x16b   :  { %404 = vsyncpa [#allocation3 + $0x1], 1 }
 0x16c   :  { %405 = vsyncpa [#allocation6], 1 }
 0x16d   :  { %406 = vsyncpa [#allocation4], 1 }
 0x16e   :  { %408 = vsyncpa [#allocation4 + $0x1], 1 }

</bundles_post_ra>
